<compile_context>
chip_gen: v5e
topology: v5e:2x2
jax: 0.10.0
libtpu: 0.0.40
codegen_flags: <defaults>
</compile_context>

<pallas_src>
import functools

import jax
import jax.numpy as jnp
from jax.experimental import pallas as pl
from jax.experimental.pallas import tpu as pltpu


def _round_up(n, m):
    return ((n + m - 1) // m) * m


def _device_kind():
    try:
        return jax.devices()[0].device_kind.lower()
    except Exception:
        return ""


def _num_tensorcores(kind):
    # v4 / v5p (megacore) and v7x expose 2 TensorCores that a "parallel" grid
    # axis can shard across; v5e / v6e have a single TensorCore per chip.
    return 2 if any(t in kind for t in ("v4", "v5p", "7x", "v7")) else 1


def _mlp_kernel(num_layers, mxu_dtype, cast_before_relu, *refs):
    """Fused eval-mode MLP forward.

    refs = (x_ref, [w, c] * num_layers, out_ref)
      x_ref : (TB, in_sub)        mxu_dtype batch tile (cast in the wrapper)
      w     : (in_pad, out_pad)   mxu_dtype weights, BN scale folded in
      c     : (1, out_pad)        f32 fused bias (= b*scale + BN shift)
    """
    x_ref = refs[0]
    out_ref = refs[-1]
    p = refs[1:-1]

    h = x_ref[...]                                   # already mxu_dtype
    for l in range(num_layers):
        w = p[2 * l][...]
        c = p[2 * l + 1][...]
        # Linear + folded BatchNorm1d (eval): MXU matmul with f32 accumulate.
        acc = jnp.dot(h, w, preferred_element_type=jnp.float32) + c
        if l < num_layers - 1:
            if cast_before_relu:                     # bf16 VPU path (v6e/v7x)
                h = jnp.maximum(acc.astype(mxu_dtype), 0.0)
            else:                                    # f32 VPU path (v5e-safe)
                h = jnp.maximum(acc, 0.0).astype(mxu_dtype)
            # Dropout = identity in eval mode.
        else:
            out_ref[...] = jax.nn.sigmoid(acc).astype(out_ref.dtype)


def _prepare_layer(lp, eps, pad_in, pad_out, w_dtype):
    """Fold BN running stats into the Linear; zero-pad to the kernel layout."""
    w = lp["w"].astype(jnp.float32)                               # (in, out)
    scale = lp["bn_gamma"].astype(jnp.float32) * jax.lax.rsqrt(
        lp["bn_var"].astype(jnp.float32) + eps)
    shift = (lp["bn_beta"].astype(jnp.float32)
             - lp["bn_mean"].astype(jnp.float32) * scale)
    w_eff = w * scale[None, :]                                    # fold BN scale into W
    c_eff = lp["b"].astype(jnp.float32) * scale + shift           # fused bias + shift
    in_, out_ = w.shape
    if (pad_in, pad_out) == (in_, out_):
        w_pad, c_pad = w_eff, c_eff[None, :]
    else:
        w_pad = jnp.zeros((pad_in, pad_out), jnp.float32).at[:in_, :out_].set(w_eff)
        c_pad = jnp.zeros((1, pad_out), jnp.float32).at[0, :out_].set(c_eff)
    return w_pad.astype(w_dtype), c_pad


def baseline_network_forward(x, params, *, batch_tile=None,
                             mxu_dtype=jnp.bfloat16, eps=1e-5):
    """Eval-mode forward of BaselineNetwork.

    x      : (B, layer_dims[0]) float array.
    params : list of per-layer dicts with keys
             w (in,out), b (out,), bn_gamma, bn_beta, bn_mean, bn_var (out,).
    Returns (B, layer_dims[-1]) float32.
    """
    mxu_dtype = jnp.dtype(mxu_dtype)
    is_bf16 = mxu_dtype == jnp.dtype(jnp.bfloat16)
    kind = _device_kind()
    num_tc = _num_tensorcores(kind)
    # bf16 elementwise ReLU only where the VPU has a bf16 path (v6e / v7x).
    cast_before_relu = bool(is_bf16 and any(t in kind for t in ("v6", "7x", "v7")))

    B, in_dim = x.shape
    num_layers = len(params)
    dims = [in_dim] + [lp["w"].shape[1] for lp in params]
    out_dim = dims[-1]

    sub = 16 if is_bf16 else 8                       # sublane multiple for mxu_dtype
    # Only the lane (output) dim of each layer needs 128-padding; layer 0's
    # input dim only needs the sublane multiple, so x is not feature-padded.
    pad_dims = [_round_up(dims[0], sub)] + [_round_up(d, 128) for d in dims[1:]]

    # Fold + pad parameters (whole-array VMEM residents for the entire grid).
    flat_args = []
    for l, lp in enumerate(params):
        w_p, c_p = _prepare_layer(lp, eps, pad_dims[l], pad_dims[l + 1], mxu_dtype)
        flat_args.extend([w_p, c_p])
    param_bytes = sum(int(a.size) * a.dtype.itemsize for a in flat_args)

    out_dtype = jnp.dtype(jnp.bfloat16) if is_bf16 else jnp.dtype(jnp.float32)
    in_itemsize = mxu_dtype.itemsize
    out_itemsize = out_dtype.itemsize

    # Batch tiling: one tile on single-TC chips, num_tc equal tiles otherwise.
    if batch_tile is None:
        if num_tc > 1 and B > sub:
            batch_tile = _round_up(pl.cdiv(B, num_tc), sub)
        else:
            batch_tile = _round_up(B, sub)
    batch_tile = max(sub, _round_up(int(batch_tile), sub))

    # VMEM guard (v7x has only 64 MiB physical / 32 MiB default scoped):
    # shrink the batch tile if the per-row working set would blow the budget.
    per_row_bytes = (2 * (pad_dims[0] * in_itemsize + pad_dims[-1] * out_itemsize)
                     + 3 * 4 * max(pad_dims))
    vmem_budget = 24 << 20
    if param_bytes > vmem_budget:
        # TODO(synk): for very wide/deep MLPs stream per-layer weights with
        # blocked BlockSpecs instead of keeping all parameters VMEM-resident.
        pass
    row_budget = max(vmem_budget - param_bytes, 1 << 20)
    max_tile = max(sub, (row_budget // per_row_bytes) // sub * sub)
    batch_tile = min(batch_tile, max_tile)
    b_pad = _round_up(B, batch_tile)

    # Input: cast once in the wrapper (bf16 halves the x DMA); pad only when
    # the batch / layer-0 sublane dims actually require it.
    if b_pad == B and pad_dims[0] == in_dim:
        x_in = x.astype(mxu_dtype)
    else:
        x_in = jnp.zeros((b_pad, pad_dims[0]), mxu_dtype)
        x_in = x_in.at[:B, :in_dim].set(x.astype(mxu_dtype))

    in_specs = [pl.BlockSpec((batch_tile, pad_dims[0]), lambda i: (i, 0))]
    for _ in range(num_layers):
        # Whole-array VMEM residents: no blocking, no double buffering.
        in_specs.append(pl.BlockSpec(memory_space=pltpu.MemorySpace.VMEM))
        in_specs.append(pl.BlockSpec(memory_space=pltpu.MemorySpace.VMEM))
    out_spec = pl.BlockSpec((batch_tile, pad_dims[-1]), lambda i: (i, 0))

    # Honest VMEM limit: residents + per-tile working set + headroom.
    need_bytes = param_bytes + batch_tile * per_row_bytes
    vmem_limit_bytes = int(min(need_bytes + (16 << 20), 100 << 20))

    kernel = functools.partial(_mlp_kernel, num_layers, mxu_dtype, cast_before_relu)
    out_padded = pl.pallas_call(
        kernel,
        out_shape=jax.ShapeDtypeStruct((b_pad, pad_dims[-1]), out_dtype),
        grid=(b_pad // batch_tile,),
        in_specs=in_specs,
        out_specs=out_spec,
        compiler_params=pltpu.CompilerParams(
            dimension_semantics=("parallel",),
            vmem_limit_bytes=vmem_limit_bytes),
    )(x_in, *flat_args)

    return out_padded[:B, :out_dim].astype(jnp.float32)


def _init_params(key, layer_dims):
    """Deterministic synthetic init mirroring nn.Linear / nn.BatchNorm1d shapes."""
    params = []
    for in_, out_ in zip(layer_dims[:-1], layer_dims[1:]):
        key, kw, kb, kg, kbt, km, kv = jax.random.split(key, 7)
        bound = 1.0 / jnp.sqrt(jnp.float32(in_))
        w = jax.random.uniform(kw, (in_, out_), jnp.float32, -bound, bound)
        b = jax.random.uniform(kb, (out_,), jnp.float32, -bound, bound)
        bn_gamma = 1.0 + 0.1 * jax.random.normal(kg, (out_,), jnp.float32)
        bn_beta = 0.1 * jax.random.normal(kbt, (out_,), jnp.float32)
        bn_mean = 0.05 * jax.random.normal(km, (out_,), jnp.float32)
        bn_var = 1.0 + 0.1 * jax.random.uniform(kv, (out_,), jnp.float32)
        params.append(dict(w=w, b=b, bn_gamma=bn_gamma, bn_beta=bn_beta,
                           bn_mean=bn_mean, bn_var=bn_var))
    return params


def _reference_forward(x, params, eps=1e-5):
    """Plain-JAX f32 reference of the same eval-mode forward."""
    h = x.astype(jnp.float32)
    n = len(params)
    for l, lp in enumerate(params):
        h = jnp.dot(h, lp["w"].astype(jnp.float32),
                    precision=jax.lax.Precision.HIGHEST) + lp["b"]
        scale = lp["bn_gamma"] / jnp.sqrt(lp["bn_var"] + eps)
        shift = lp["bn_beta"] - lp["bn_mean"] * scale
        h = h * scale + shift
        h = jnp.maximum(h, 0.0) if l < n - 1 else jax.nn.sigmoid(h)
    return h


if __name__ == "__main__":
    # Small MLP over flat feature vectors, consistent with
    # BaselineNetwork(layer_dims, dropout). Eval-mode: Dropout is identity.
    layer_dims = [32, 64, 48, 1]
    dropout = 0.1                  # identity in eval-mode forward
    B = 64

    key = jax.random.PRNGKey(0)
    kx, kp = jax.random.split(key)
    x = jax.random.normal(kx, (B, layer_dims[0]), jnp.float32)
    params = _init_params(kp, layer_dims)

    ref = _reference_forward(x, params)

    # f32 MXU operands: checks BN folding / padding logic tightly.
    out_f32 = jax.block_until_ready(
        baseline_network_forward(x, params, mxu_dtype=jnp.float32))
    assert out_f32.shape == (B, layer_dims[-1])
    assert jnp.allclose(out_f32, ref, atol=5e-3, rtol=5e-3), "f32 mismatch vs reference"

    # Fast path: bf16 MXU operands + bf16 writeback, f32 accumulation.
    out_bf16 = jax.block_until_ready(
        baseline_network_forward(x, params, mxu_dtype=jnp.bfloat16))
    assert out_bf16.shape == (B, layer_dims[-1])
    assert jnp.allclose(out_bf16, ref, atol=5e-2, rtol=5e-2), "bf16 mismatch vs reference"

    print("KERNEL_OK")
</pallas_src>

<mosaic_0001>
module attributes {stable_mosaic.version = 11 : i64} {
  func.func @_mlp_kernel(%arg0: i32, %arg1: memref<64x32xf32, #tpu.memory_space<vmem>>, %arg2: memref<32x128xf32, #tpu.memory_space<vmem>>, %arg3: memref<1x128xf32, #tpu.memory_space<vmem>>, %arg4: memref<128x128xf32, #tpu.memory_space<vmem>>, %arg5: memref<1x128xf32, #tpu.memory_space<vmem>>, %arg6: memref<128x128xf32, #tpu.memory_space<vmem>>, %arg7: memref<1x128xf32, #tpu.memory_space<vmem>>, %arg8: memref<64x128xf32, #tpu.memory_space<vmem>>) attributes {dimension_semantics = [#tpu.dimension_semantics<parallel>], iteration_bounds = array<i64: 1>, scalar_prefetch = 0 : i64, scratch_operands = 0 : i64, tpu.core_type = #tpu.core_type<tc>, window_params = [{transform_indices = @transform_0, window_bounds = array<i64: 64, 32>}, {pipeline_mode = #tpu.pipeline_mode<synchronous>, transform_indices = @transform_1, window_bounds = array<i64: 32, 128>}, {pipeline_mode = #tpu.pipeline_mode<synchronous>, transform_indices = @transform_2, window_bounds = array<i64: 1, 128>}, {pipeline_mode = #tpu.pipeline_mode<synchronous>, transform_indices = @transform_3, window_bounds = array<i64: 128, 128>}, {pipeline_mode = #tpu.pipeline_mode<synchronous>, transform_indices = @transform_4, window_bounds = array<i64: 1, 128>}, {pipeline_mode = #tpu.pipeline_mode<synchronous>, transform_indices = @transform_5, window_bounds = array<i64: 128, 128>}, {pipeline_mode = #tpu.pipeline_mode<synchronous>, transform_indices = @transform_6, window_bounds = array<i64: 1, 128>}, {transform_indices = @transform_7, window_bounds = array<i64: 64, 128>}]} {
    %c0 = arith.constant 0 : index
    %c0_0 = arith.constant 0 : index
    %0 = vector.load %arg1[%c0, %c0_0] : memref<64x32xf32, #tpu.memory_space<vmem>>, vector<64x32xf32>
    %c0_1 = arith.constant 0 : index
    %c0_2 = arith.constant 0 : index
    %1 = vector.load %arg2[%c0_1, %c0_2] : memref<32x128xf32, #tpu.memory_space<vmem>>, vector<32x128xf32>
    %c0_3 = arith.constant 0 : index
    %c0_4 = arith.constant 0 : index
    %2 = vector.load %arg3[%c0_3, %c0_4] : memref<1x128xf32, #tpu.memory_space<vmem>>, vector<1x128xf32>
    %cst = arith.constant dense<0.000000e+00> : vector<64x128xf32>
    %3 = tpu.matmul %0, %1, %cst {dimension_numbers = #tpu.dot_dimension_numbers<[1], [0], [0], [1], [0, 0, 1, 1], [], []>} : vector<64x32xf32>, vector<32x128xf32>, vector<64x128xf32> -> vector<64x128xf32>
    %4 = vector.broadcast %2 : vector<1x128xf32> to vector<64x128xf32>
    %5 = arith.addf %3, %4 : vector<64x128xf32>
    %cst_5 = arith.constant 0.000000e+00 : f32
    %6 = vector.broadcast %cst_5 : f32 to vector<64x128xf32>
    %7 = arith.maximumf %5, %6 : vector<64x128xf32>
    %c0_6 = arith.constant 0 : index
    %c0_7 = arith.constant 0 : index
    %8 = vector.load %arg4[%c0_6, %c0_7] : memref<128x128xf32, #tpu.memory_space<vmem>>, vector<128x128xf32>
    %c0_8 = arith.constant 0 : index
    %c0_9 = arith.constant 0 : index
    %9 = vector.load %arg5[%c0_8, %c0_9] : memref<1x128xf32, #tpu.memory_space<vmem>>, vector<1x128xf32>
    %cst_10 = arith.constant dense<0.000000e+00> : vector<64x128xf32>
    %10 = tpu.matmul %7, %8, %cst_10 {dimension_numbers = #tpu.dot_dimension_numbers<[1], [0], [0], [1], [0, 0, 1, 1], [], []>} : vector<64x128xf32>, vector<128x128xf32>, vector<64x128xf32> -> vector<64x128xf32>
    %11 = vector.broadcast %9 : vector<1x128xf32> to vector<64x128xf32>
    %12 = arith.addf %10, %11 : vector<64x128xf32>
    %cst_11 = arith.constant 0.000000e+00 : f32
    %13 = vector.broadcast %cst_11 : f32 to vector<64x128xf32>
    %14 = arith.maximumf %12, %13 : vector<64x128xf32>
    %c0_12 = arith.constant 0 : index
    %c0_13 = arith.constant 0 : index
    %15 = vector.load %arg6[%c0_12, %c0_13] : memref<128x128xf32, #tpu.memory_space<vmem>>, vector<128x128xf32>
    %c0_14 = arith.constant 0 : index
    %c0_15 = arith.constant 0 : index
    %16 = vector.load %arg7[%c0_14, %c0_15] : memref<1x128xf32, #tpu.memory_space<vmem>>, vector<1x128xf32>
    %cst_16 = arith.constant dense<0.000000e+00> : vector<64x128xf32>
    %17 = tpu.matmul %14, %15, %cst_16 {dimension_numbers = #tpu.dot_dimension_numbers<[1], [0], [0], [1], [0, 0, 1, 1], [], []>} : vector<64x128xf32>, vector<128x128xf32>, vector<64x128xf32> -> vector<64x128xf32>
    %18 = vector.broadcast %16 : vector<1x128xf32> to vector<64x128xf32>
    %19 = arith.addf %17, %18 : vector<64x128xf32>
    %20 = arith.negf %19 : vector<64x128xf32>
    %21 = math.exp %20 : vector<64x128xf32>
    %cst_17 = arith.constant 1.000000e+00 : f32
    %22 = vector.broadcast %cst_17 : f32 to vector<64x128xf32>
    %23 = arith.addf %22, %21 : vector<64x128xf32>
    %24 = arith.divf %22, %23 : vector<64x128xf32>
    %c0_18 = arith.constant 0 : index
    %c0_19 = arith.constant 0 : index
    %25 = vector.load %arg8[%c0_18, %c0_19] : memref<64x128xf32, #tpu.memory_space<vmem>>, vector<64x128xf32>
    tpu.vector_store %arg8[%c0_18, %c0_19], %24 {strides = array<i32>} : memref<64x128xf32, #tpu.memory_space<vmem>>, vector<64x128xf32>,
    return
  }
  func.func @transform_0(%arg0: i32) -> (i32, i32) {
    %c0_i32 = arith.constant 0 : i32
    %c0_i32_0 = arith.constant 0 : i32
    return %arg0, %c0_i32 : i32, i32
  }
  func.func @transform_1(%arg0: i32) -> (i32, i32) {
    %c0_i32 = arith.constant 0 : i32
    %c0_i32_0 = arith.constant 0 : i32
    %c0_i32_1 = arith.constant 0 : i32
    return %c0_i32, %c0_i32_0 : i32, i32
  }
  func.func @transform_2(%arg0: i32) -> (i32, i32) {
    %c0_i32 = arith.constant 0 : i32
    %c0_i32_0 = arith.constant 0 : i32
    %c0_i32_1 = arith.constant 0 : i32
    return %c0_i32, %c0_i32_0 : i32, i32
  }
  func.func @transform_3(%arg0: i32) -> (i32, i32) {
    %c0_i32 = arith.constant 0 : i32
    %c0_i32_0 = arith.constant 0 : i32
    %c0_i32_1 = arith.constant 0 : i32
    return %c0_i32, %c0_i32_0 : i32, i32
  }
  func.func @transform_4(%arg0: i32) -> (i32, i32) {
    %c0_i32 = arith.constant 0 : i32
    %c0_i32_0 = arith.constant 0 : i32
    %c0_i32_1 = arith.constant 0 : i32
    return %c0_i32, %c0_i32_0 : i32, i32
  }
  func.func @transform_5(%arg0: i32) -> (i32, i32) {
    %c0_i32 = arith.constant 0 : i32
    %c0_i32_0 = arith.constant 0 : i32
    %c0_i32_1 = arith.constant 0 : i32
    return %c0_i32, %c0_i32_0 : i32, i32
  }
  func.func @transform_6(%arg0: i32) -> (i32, i32) {
    %c0_i32 = arith.constant 0 : i32
    %c0_i32_0 = arith.constant 0 : i32
    %c0_i32_1 = arith.constant 0 : i32
    return %c0_i32, %c0_i32_0 : i32, i32
  }
  func.func @transform_7(%arg0: i32) -> (i32, i32) {
    %c0_i32 = arith.constant 0 : i32
    %c0_i32_0 = arith.constant 0 : i32
    return %arg0, %c0_i32 : i32, i32
  }
}

</mosaic_0001>

<bundles_post_ra>
// kernel: tpu_custom_call.1
= control target key start
LH: loop header
LB: loop body
LE: loop exit
PB: predicated region body
PF: predicated region fallthrough
CT: control target
= control target key end

     0   :  { %12 = vsyncpa [#allocation3], 0  ;;  %s761_s0 = inlined_call_operand.vmem [shape: f32[64,32], index: 0, kind: input, shape index: {}]   ;;  %s762_s1 = inlined_call_operand.vmem [shape: f32[32,128], index: 1, kind: input, shape index: {}]   ;;  %s763_s2 = inlined_call_operand.vmem [shape: f32[1,128], index: 2, kind: input, shape index: {}]   ;;  %s764_s3 = inlined_call_operand.hbm [shape: f32[128,128], index: 3, kind: input, shape index: {}]   ;;  %s765_s4 = inlined_call_operand.vmem [shape: f32[1,128], index: 4, kind: input, shape index: {}]   ;;  %s766_s5 = inlined_call_operand.hbm [shape: f32[128,128], index: 5, kind: input, shape index: {}]   ;;  %s767_s6 = inlined_call_operand.vmem [shape: f32[1,128], index: 6, kind: input, shape index: {}]   ;;  %s768_s7 = inlined_call_operand.hbm [shape: f32[64,128], index: 7, kind: output, shape index: {}]  }
   0x1   :  { %13 = vsyncpa [#allocation6], 0 }
   0x2   :  { %14 = vsyncpa [#allocation4], 0  ;;  %s25_s26 = sshll.u32 %s764_s3, 4  ;;  %s625_s27 = smov [#allocation2]   ;;  %s26_s26 = int_to_ptr.hbm [resolvable:$true] %s25_s26 }
   0x3   :  { %s27_s28 = sshll.u32 %s625_s27, 4  ;;  %s40_s8 = sshll.u32 %s766_s5, 4  ;;  %s28_s28 = int_to_ptr.vmem [resolvable:$true] %s27_s28  ;;  %s41_s8 = int_to_ptr.hbm [resolvable:$true] %s40_s8 }
   0x4   :  { %s626_s9 = smov 128   ;;  %s627_s10 = smov 8  }
   0x5   :  { %33 = dma.hbm_to_vmem [thread:$0]  %s26_s26, 2048, %s28_s28, [#allocation3], %s626_s9, %s626_s9, %s627_s10  }
   0x6   :  { %s628_s11 = smov [#allocation5]  }
   0x7   :  { %s42_s12 = sshll.u32 %s628_s11, 4  ;;  %s43_s12 = int_to_ptr.vmem [resolvable:$true] %s42_s12 }
   0x8   :  { %48 = dma.hbm_to_vmem [thread:$0]  %s41_s8, 2048, %s43_s12, [#allocation6], %s626_s9, %s626_s9, %s627_s10  }
   0x9   :  { %619 = dma.done.wait [#allocation3], 2048  }
   0xa   :  { %620 = vsyncadd [#allocation3], 4294965248 }
   0xb   :  { %621 = dma.done.wait [#allocation6], 2048  }
   0xc   :  { %622 = vsyncadd [#allocation6], 4294965248  ;;  %v70_v0 = vld [vmem:[%s762_s1 + $0x18] sm:$0xff]  ;;  %v69_v1 = vld [vmem:[%s762_s1 + $0x10] sm:$0xff]  ;;  %vm75_vm0 = vcmask 261120   ;;  %s445_s17 = sshll.u32 %s768_s7, 4  ;;  %s446_s17 = int_to_ptr.hbm [resolvable:$true] %s445_s17 }
   0xd   :  { %112 = vmatpush.msra.mxu0 %v70_v0  ;;  %v68_v2 = vld [vmem:[%s762_s1 + $0x8] sm:$0xff]  ;;  %v67_v3 = vld [vmem:[%s762_s1] sm:$0xff]  ;;  %v61_v6 = vld [vmem:[%s761_s0 + $0x10] sm:$0xff] }
   0xe   :  { %v59_v4 = vld [vmem:[%s761_s0] sm:$0xff]  ;;  %v60_v5 = vld [vmem:[%s761_s0 + $0x8] sm:$0xff]  ;;  %v62_v7 = vld [vmem:[%s761_s0 + $0x18] sm:$0xff] }
   0xf   :  { %113 = vmatpush.msra.mxu0 %v69_v1  ;;  %v164_v8 = vld [vmem:[#allocation2 + $0x78] sm:$0xff]  ;;  %v163_v9 = vld [vmem:[#allocation2 + $0x70] sm:$0xff]  ;;  %v162_v10 = vld [vmem:[#allocation2 + $0x68] sm:$0xff] }
  0x10   :  { %169 = vmatpush.msra.mxu1 %v164_v8  ;;  %475 = vmatpush.msra.mxu3 %v164_v8  ;;  %v161_v11 = vld [vmem:[#allocation2 + $0x60] sm:$0xff]  ;;  %v160_v13 = vld [vmem:[#allocation2 + $0x58] sm:$0xff]  ;;  %v159_v14 = vld [vmem:[#allocation2 + $0x50] sm:$0xff] }
  0x11   :  { %114 = vmatpush.msra.mxu0 %v68_v2  ;;  %v63_v12 = vld [vmem:[%s761_s0 + $0x20] sm:$0xff]  ;;  %v158_v15 = vld [vmem:[#allocation2 + $0x48] sm:$0xff]  ;;  %v156_v18 = vld [vmem:[#allocation2 + $0x38] sm:$0xff] }
  0x12   :  { %170 = vmatpush.msra.mxu1 %v163_v9  ;;  %476 = vmatpush.msra.mxu3 %v163_v9  ;;  %v157_v16 = vld [vmem:[#allocation2 + $0x40] sm:$0xff]  ;;  %v64_v17 = vld [vmem:[%s761_s0 + $0x28] sm:$0xff]  ;;  %v155_v19 = vld [vmem:[#allocation2 + $0x30] sm:$0xff] }
  0x13   :  { %115 = vmatpush.msra.mxu0 %v67_v3  ;;  %v154_v20 = vld [vmem:[#allocation2 + $0x28] sm:$0xff]  ;;  %v153_v21 = vld [vmem:[#allocation2 + $0x20] sm:$0xff]  ;;  %v65_v22 = vld [vmem:[%s761_s0 + $0x30] sm:$0xff] }
  0x14   :  { %459 = vmatmul.msk.f32.vlgmr.msra.gmra.mxu0 %vm75_vm0, %v59_v4  ;;  %171 = vmatpush.msra.mxu1 %v162_v10  ;;  %v152_v23 = vld [vmem:[#allocation2 + $0x18] sm:$0xff]  ;;  %v151_v25 = vld [vmem:[#allocation2 + $0x10] sm:$0xff]  ;;  %v150_v26 = vld [vmem:[#allocation2 + $0x8] sm:$0xff] }
  0x15   :  { %477 = vmatpush.msra.mxu3 %v162_v10  ;;  %v66_v24 = vld [vmem:[%s761_s0 + $0x38] sm:$0xff]  ;;  %v149_v27 = vld [vmem:[#allocation2] sm:$0xff]  ;;  %v232_v42 = vld [vmem:[#allocation5 + $0x70] sm:$0xff] }
  0x16   :  { %172 = vmatpush.msra.mxu1 %v161_v11  ;;  %v729_v28 = vld [vmem:[%s763_s2] ss:$0 sm:$0xff]  ;;  %v233_v41 = vld [vmem:[#allocation5 + $0x78] sm:$0xff]  ;;  %v231_v43 = vld [vmem:[#allocation5 + $0x68] sm:$0xff] }
  0x17   :  { %478 = vmatpush.msra.mxu3 %v161_v11  ;;  %238 = vmatpush.msra.mxu2 %v233_v41  ;;  %v230_v46 = vld [vmem:[#allocation5 + $0x60] sm:$0xff]  ;;  %v229_v48 = vld [vmem:[#allocation5 + $0x58] sm:$0xff]  ;;  %v228_v49 = vld [vmem:[#allocation5 + $0x50] sm:$0xff] }
  0x18   :  { %173 = vmatpush.msra.mxu1 %v160_v13  ;;  %v227_v50 = vld [vmem:[#allocation5 + $0x48] sm:$0xff]  ;;  %v226_v53 = vld [vmem:[#allocation5 + $0x40] sm:$0xff]  ;;  %v225_v55 = vld [vmem:[#allocation5 + $0x38] sm:$0xff] }
  0x19   :  { %479 = vmatpush.msra.mxu3 %v160_v13  ;;  %239 = vmatpush.msra.mxu2 %v232_v42  ;;  %v224_v56 = vld [vmem:[#allocation5 + $0x30] sm:$0xff]  ;;  %v223_v57 = vld [vmem:[#allocation5 + $0x28] sm:$0xff]  ;;  %v222_v60 = vld [vmem:[#allocation5 + $0x20] sm:$0xff] }
  0x1a   :  { %174 = vmatpush.msra.mxu1 %v159_v14  ;;  %v221_v62 = vld [vmem:[#allocation5 + $0x18] sm:$0xff]  ;;  %v220_v2 = vld [vmem:[#allocation5 + $0x10] sm:$0xff]  ;;  %v219_v3 = vld [vmem:[#allocation5 + $0x8] sm:$0xff] }
  0x1b   :  { %480 = vmatpush.msra.mxu3 %v159_v14  ;;  %240 = vmatpush.msra.mxu2 %v231_v43  ;;  %v218_v4 = vld [vmem:[#allocation5] sm:$0xff] }
  0x1c   :  { %460 = vmatmul.msk.f32.gmra.mxu0 %vm75_vm0, %v60_v5  ;;  %175 = vmatpush.msra.mxu1 %v158_v15  ;;  %v513_v5 = vld [vmem:[%s765_s4] ss:$0 sm:$0xff] }
  0x1d   :  { %481 = vmatpush.msra.mxu3 %v158_v15  ;;  %241 = vmatpush.msra.mxu2 %v230_v46 }
  0x1e   :  { %176 = vmatpush.msra.mxu1 %v157_v16 }
  0x1f   :  { %482 = vmatpush.msra.mxu3 %v157_v16  ;;  %242 = vmatpush.msra.mxu2 %v229_v48 }
  0x20   :  { %177 = vmatpush.msra.mxu1 %v156_v18 }
  0x21   :  { %483 = vmatpush.msra.mxu3 %v156_v18  ;;  %243 = vmatpush.msra.mxu2 %v228_v49 }
  0x22   :  { %178 = vmatpush.msra.mxu1 %v155_v19 }
  0x23   :  { %484 = vmatpush.msra.mxu3 %v155_v19  ;;  %244 = vmatpush.msra.mxu2 %v227_v50 }
  0x24   :  { %461 = vmatmul.msk.f32.gmra.mxu0 %vm75_vm0, %v61_v6  ;;  %179 = vmatpush.msra.mxu1 %v154_v20 }
  0x25   :  { %485 = vmatpush.msra.mxu3 %v154_v20  ;;  %245 = vmatpush.msra.mxu2 %v226_v53 }
  0x26   :  { %180 = vmatpush.msra.mxu1 %v153_v21 }
  0x27   :  { %486 = vmatpush.msra.mxu3 %v153_v21  ;;  %246 = vmatpush.msra.mxu2 %v225_v55 }
  0x28   :  { %181 = vmatpush.msra.mxu1 %v152_v23 }
  0x29   :  { %487 = vmatpush.msra.mxu3 %v152_v23  ;;  %247 = vmatpush.msra.mxu2 %v224_v56 }
  0x2a   :  { %182 = vmatpush.msra.mxu1 %v151_v25 }
  0x2b   :  { %488 = vmatpush.msra.mxu3 %v151_v25  ;;  %248 = vmatpush.msra.mxu2 %v223_v57 }
  0x2c   :  { %462 = vmatmul.msk.f32.gmra.mxu0 %vm75_vm0, %v62_v7  ;;  %183 = vmatpush.msra.mxu1 %v150_v26 }
  0x2d   :  { %489 = vmatpush.msra.mxu3 %v150_v26  ;;  %249 = vmatpush.msra.mxu2 %v222_v60 }
  0x2e   :  { %184 = vmatpush.msra.mxu1 %v149_v27 }
  0x2f   :  { %490 = vmatpush.msra.mxu3 %v149_v27  ;;  %250 = vmatpush.msra.mxu2 %v221_v62 }
  0x31   :  { %491 = vmatpush.msrb.mxu3 %v233_v41  ;;  %251 = vmatpush.msra.mxu2 %v220_v2 }
  0x33   :  { %492 = vmatpush.msrb.mxu3 %v232_v42  ;;  %252 = vmatpush.msra.mxu2 %v219_v3 }
  0x34   :  { %463 = vmatmul.msk.f32.gmra.mxu0 %vm75_vm0, %v63_v12 }
  0x35   :  { %493 = vmatpush.msrb.mxu3 %v231_v43  ;;  %253 = vmatpush.msra.mxu2 %v218_v4 }
  0x37   :  { %494 = vmatpush.msrb.mxu3 %v230_v46 }
  0x39   :  { %495 = vmatpush.msrb.mxu3 %v229_v48 }
  0x3b   :  { %496 = vmatpush.msrb.mxu3 %v228_v49 }
  0x3c   :  { %464 = vmatmul.msk.f32.gmra.mxu0 %vm75_vm0, %v64_v17 }
  0x3d   :  { %497 = vmatpush.msrb.mxu3 %v227_v50 }
  0x3f   :  { %498 = vmatpush.msrb.mxu3 %v226_v53 }
  0x41   :  { %499 = vmatpush.msrb.mxu3 %v225_v55 }
  0x43   :  { %500 = vmatpush.msrb.mxu3 %v224_v56 }
  0x44   :  { %465 = vmatmul.msk.f32.gmra.mxu0 %vm75_vm0, %v65_v22 }
  0x45   :  { %501 = vmatpush.msrb.mxu3 %v223_v57 }
  0x47   :  { %502 = vmatpush.msrb.mxu3 %v222_v60 }
  0x49   :  { %503 = vmatpush.msrb.mxu3 %v221_v62 }
  0x4b   :  { %504 = vmatpush.msrb.mxu3 %v220_v2 }
  0x4c   :  { %466 = vmatmul.msk.f32.gmra.mxu0 %vm75_vm0, %v66_v24 }
  0x4d   :  { %505 = vmatpush.msrb.mxu3 %v219_v3 }
  0x4f   :  { %506 = vmatpush.msrb.mxu3 %v218_v4 }
  0x91   :  { %v117_v29 = vpop.f32.mrf.mxu0 }
  0x92   :  { %v118_v30 = vadd.f32 %v729_v28, %v117_v29 }
  0x94   :  { %v141_v31 = vmax.f32 %v118_v30, 0.0  ;;  %v745_v30 = vld [vmem:[%s767_s6] ss:$0 sm:$0xff]  ;;  %s629_s6 = smov [#allocation7]  }
  0x95   :  { %s443_s14 = sshll.u32 %s629_s6, 4  ;;  %s444_s14 = int_to_ptr.vmem [resolvable:$true] %s443_s14 }
  0x96   :  { %185 = vmatmul.f32.vlgmr.msra.gmra.mxu1 %v141_v31 }
  0x99   :  { %v120_v32 = vpop.f32.mrf.mxu0 }
  0x9a   :  { %v121_v33 = vadd.f32 %v729_v28, %v120_v32 }
  0x9c   :  { %v142_v34 = vmax.f32 %v121_v33, 0.0 }
  0x9e   :  { %188 = vmatmul.f32.gmra.mxu1 %v142_v34 }
  0xa1   :  { %v123_v35 = vpop.f32.mrf.mxu0 }
  0xa2   :  { %v124_v36 = vadd.f32 %v729_v28, %v123_v35 }
  0xa4   :  { %v143_v37 = vmax.f32 %v124_v36, 0.0 }
  0xa6   :  { %191 = vmatmul.f32.gmra.mxu1 %v143_v37 }
  0xa9   :  { %v126_v38 = vpop.f32.mrf.mxu0 }
  0xaa   :  { %v127_v39 = vadd.f32 %v729_v28, %v126_v38 }
  0xac   :  { %v144_v40 = vmax.f32 %v127_v39, 0.0 }
  0xae   :  { %194 = vmatmul.f32.gmra.mxu1 %v144_v40 }
  0xb1   :  { %v129_v44 = vpop.f32.mrf.mxu0 }
  0xb2   :  { %v130_v45 = vadd.f32 %v729_v28, %v129_v44 }
  0xb4   :  { %v145_v47 = vmax.f32 %v130_v45, 0.0 }
  0xb6   :  { %197 = vmatmul.f32.gmra.mxu1 %v145_v47 }
  0xb9   :  { %v132_v51 = vpop.f32.mrf.mxu0 }
  0xba   :  { %v133_v52 = vadd.f32 %v729_v28, %v132_v51 }
  0xbc   :  { %v146_v54 = vmax.f32 %v133_v52, 0.0 }
  0xbe   :  { %200 = vmatmul.f32.gmra.mxu1 %v146_v54 }
  0xc1   :  { %v135_v58 = vpop.f32.mrf.mxu0 }
  0xc2   :  { %v136_v59 = vadd.f32 %v729_v28, %v135_v58 }
  0xc4   :  { %v147_v61 = vmax.f32 %v136_v59, 0.0 }
  0xc6   :  { %203 = vmatmul.f32.vlgmr.msra.gmra.mxu3 %v147_v61 }
  0xc9   :  { %v138_v63 = vpop.f32.mrf.mxu0 }
  0xca   :  { %v139_v0 = vadd.f32 %v729_v28, %v138_v63 }
  0xcc   :  { %v148_v1 = vmax.f32 %v139_v0, 0.0 }
  0xce   :  { %206 = vmatmul.f32.gmra.mxu3 %v148_v1 }
 0x113   :  { %v186_v6 = vpop.f32.mrf.mxu1 }
 0x114   :  { %v187_v7 = vadd.f32 %v513_v5, %v186_v6 }
 0x116   :  { %v210_v8 = vmax.f32 %v187_v7, 0.0 }
 0x118   :  { %254 = vmatmul.f32.vlgmr.msra.gmra.mxu2 %v210_v8 }
 0x11b   :  { %v189_v9 = vpop.f32.mrf.mxu1 }
 0x11c   :  { %v190_v10 = vadd.f32 %v513_v5, %v189_v9 }
 0x11e   :  { %v211_v11 = vmax.f32 %v190_v10, 0.0 }
 0x120   :  { %257 = vmatmul.f32.gmra.mxu2 %v211_v11 }
 0x123   :  { %v192_v12 = vpop.f32.mrf.mxu1 }
 0x124   :  { %v193_v13 = vadd.f32 %v513_v5, %v192_v12 }
 0x126   :  { %v212_v14 = vmax.f32 %v193_v13, 0.0 }
 0x128   :  { %260 = vmatmul.f32.gmra.mxu2 %v212_v14 }
 0x12b   :  { %v195_v15 = vpop.f32.mrf.mxu1 }
 0x12c   :  { %v196_v16 = vadd.f32 %v513_v5, %v195_v15 }
 0x12e   :  { %v213_v17 = vmax.f32 %v196_v16, 0.0 }
 0x130   :  { %263 = vmatmul.f32.gmra.mxu2 %v213_v17 }
 0x133   :  { %v198_v18 = vpop.f32.mrf.mxu1 }
 0x134   :  { %v199_v19 = vadd.f32 %v513_v5, %v198_v18 }
 0x136   :  { %v214_v20 = vmax.f32 %v199_v19, 0.0 }
 0x138   :  { %266 = vmatmul.f32.gmra.mxu2 %v214_v20 }
 0x13b   :  { %v201_v21 = vpop.f32.mrf.mxu1 }
 0x13c   :  { %v202_v22 = vadd.f32 %v513_v5, %v201_v21 }
 0x13e   :  { %v215_v23 = vmax.f32 %v202_v22, 0.0 }
 0x140   :  { %269 = vmatmul.f32.gmra.mxu2 %v215_v23 }
 0x149   :  { %v204_v24 = vpop.f32.mrf.mxu3 }
 0x14a   :  { %v205_v25 = vadd.f32 %v513_v5, %v204_v24 }
 0x14c   :  { %v216_v26 = vmax.f32 %v205_v25, 0.0 }
 0x14e   :  { %272 = vmatmul.f32.vlgmr.msrb.gmra.mxu3 %v216_v26 }
 0x151   :  { %v207_v27 = vpop.f32.mrf.mxu3 }
 0x152   :  { %v208_v28 = vadd.f32 %v513_v5, %v207_v27 }
 0x154   :  { %v217_v29 = vmax.f32 %v208_v28, 0.0 }
 0x156   :  { %275 = vmatmul.f32.gmra.mxu3 %v217_v29 }
 0x19b   :  { %v255_v31 = vpop.f32.mrf.mxu2 }
 0x19c   :  { %v256_v32 = vadd.f32 %v745_v30, %v255_v31 }
 0x19e   :  { %v467_v33 = vmul.f32 -1.442695, %v256_v32 }
 0x1a0   :  { %515 = vpow2.f32 %v467_v33 }
 0x1a3   :  { %v258_v34 = vpop.f32.mrf.mxu2 }
 0x1a4   :  { %v259_v35 = vadd.f32 %v745_v30, %v258_v34 }
 0x1a6   :  { %v516_v36 = vpop.eup %515  ;;  %v468_v37 = vmul.f32 -1.442695, %v259_v35 }
 0x1a7   :  { %v303_v38 = vadd.f32 1.0, %v516_v36 }
 0x1a8   :  { %517 = vpow2.f32 %v468_v37 }
 0x1a9   :  { %519 = vrcp.f32 %v303_v38  ;;  %v322_v47 = vand.u32 2147483648, %v303_v38  ;;  %v320_v50 = vand.u32 2147483647, %v303_v38  ;;  %vm316_vm2 = vweird.f32 %v303_v38 }
 0x1ab   :  { %v261_v39 = vpop.f32.mrf.mxu2  ;;  %v323_v56 = vor.u32 1.1754944e-38, %v322_v47  ;;  %vm321_vm4 = vcmp.eq.f32.partialorder %v320_v50, 8.507059e+37 }
 0x1ac   :  { %v262_v40 = vadd.f32 %v745_v30, %v261_v39 }
 0x1ae   :  { %v518_v41 = vpop.eup %517  ;;  %v469_v42 = vmul.f32 -1.442695, %v262_v40 }
 0x1af   :  { %v520_v43 = vpop.eup %519  ;;  %v304_v44 = vadd.f32 1.0, %v518_v41 }
 0x1b0   :  { %v312_v45 = vmul.f32 %v520_v43, %v303_v38  ;;  %521 = vpow2.f32 %v469_v42  ;;  %vm317_vm1 = vweird.f32 %v520_v43 }
 0x1b1   :  { %523 = vrcp.f32 %v304_v44  ;;  %vm318_vm3 = vmor %vm316_vm2, %vm317_vm1  ;;  %v337_v62 = vand.u32 2147483648, %v304_v44  ;;  %v335_v1 = vand.u32 2147483647, %v304_v44  ;;  %vm331_vm6 = vweird.f32 %v304_v44 }
 0x1b2   :  { %v313_v46 = vsub.f32 1.0, %v312_v45 }
 0x1b3   :  { %v264_v48 = vpop.f32.mrf.mxu2  ;;  %v338_v7 = vor.u32 1.1754944e-38, %v337_v62  ;;  %vm336_vm8 = vcmp.eq.f32.partialorder %v335_v1, 8.507059e+37 }
 0x1b4   :  { %v314_v49 = vmul.f32 %v520_v43, %v313_v46  ;;  %v265_v51 = vadd.f32 %v745_v30, %v264_v48 }
 0x1b6   :  { %v522_v52 = vpop.eup %521  ;;  %v315_v53 = vadd.f32 %v520_v43, %v314_v49  ;;  %v470_v54 = vmul.f32 -1.442695, %v265_v51 }
 0x1b7   :  { %v524_v55 = vpop.eup %523  ;;  %v305_v57 = vadd.f32 1.0, %v522_v52 }
 0x1b8   :  { %v319_v58 = vsel %vm318_vm3, %v520_v43, %v315_v53  ;;  %v327_v59 = vmul.f32 %v524_v55, %v304_v44  ;;  %525 = vpow2.f32 %v470_v54  ;;  %vm332_vm5 = vweird.f32 %v524_v55 }
 0x1b9   :  { %v324_v60 = vsel %vm321_vm4, %v323_v56, %v319_v58  ;;  %527 = vrcp.f32 %v305_v57  ;;  %vm333_vm7 = vmor %vm331_vm6, %vm332_vm5  ;;  %v352_v13 = vand.u32 2147483648, %v305_v57  ;;  %v350_v16 = vand.u32 2147483647, %v305_v57 }
 0x1ba   :  { %431 = vst [vmem:[#allocation7] sm:$0xff] %v324_v60  ;;  %v328_v61 = vsub.f32 1.0, %v327_v59  ;;  %vm346_vm10 = vweird.f32 %v305_v57 }
 0x1bb   :  { %v267_v63 = vpop.f32.mrf.mxu2  ;;  %v353_v22 = vor.u32 1.1754944e-38, %v352_v13  ;;  %vm351_vm12 = vcmp.eq.f32.partialorder %v350_v16, 8.507059e+37 }
 0x1bc   :  { %v329_v0 = vmul.f32 %v524_v55, %v328_v61  ;;  %v268_v2 = vadd.f32 %v745_v30, %v267_v63 }
 0x1be   :  { %v526_v3 = vpop.eup %525  ;;  %v330_v4 = vadd.f32 %v524_v55, %v329_v0  ;;  %v471_v5 = vmul.f32 -1.442695, %v268_v2 }
 0x1bf   :  { %v528_v6 = vpop.eup %527  ;;  %v306_v8 = vadd.f32 1.0, %v526_v3 }
 0x1c0   :  { %v334_v9 = vsel %vm333_vm7, %v524_v55, %v330_v4  ;;  %v342_v10 = vmul.f32 %v528_v6, %v305_v57  ;;  %529 = vpow2.f32 %v471_v5  ;;  %vm347_vm9 = vweird.f32 %v528_v6 }
 0x1c1   :  { %v339_v11 = vsel %vm336_vm8, %v338_v7, %v334_v9  ;;  %531 = vrcp.f32 %v306_v8  ;;  %vm348_vm11 = vmor %vm346_vm10, %vm347_vm9  ;;  %v367_v28 = vand.u32 2147483648, %v306_v8  ;;  %v365_v31 = vand.u32 2147483647, %v306_v8 }
 0x1c2   :  { %432 = vst [vmem:[#allocation7 + $0x8] sm:$0xff] %v339_v11  ;;  %v343_v12 = vsub.f32 1.0, %v342_v10  ;;  %vm361_vm14 = vweird.f32 %v306_v8 }
 0x1c3   :  { %v270_v14 = vpop.f32.mrf.mxu2  ;;  %v368_v35 = vor.u32 1.1754944e-38, %v367_v28  ;;  %vm366_vm0 = vcmp.eq.f32.partialorder %v365_v31, 8.507059e+37 }
 0x1c4   :  { %v344_v15 = vmul.f32 %v528_v6, %v343_v12  ;;  %v271_v17 = vadd.f32 %v745_v30, %v270_v14 }
 0x1c6   :  { %v530_v18 = vpop.eup %529  ;;  %v345_v19 = vadd.f32 %v528_v6, %v344_v15  ;;  %v472_v20 = vmul.f32 -1.442695, %v271_v17 }
 0x1c7   :  { %v532_v21 = vpop.eup %531  ;;  %v307_v23 = vadd.f32 1.0, %v530_v18 }
 0x1c8   :  { %v349_v24 = vsel %vm348_vm11, %v528_v6, %v345_v19  ;;  %v357_v25 = vmul.f32 %v532_v21, %v306_v8  ;;  %533 = vpow2.f32 %v472_v20  ;;  %vm362_vm13 = vweird.f32 %v532_v21 }
 0x1c9   :  { %v354_v26 = vsel %vm351_vm12, %v353_v22, %v349_v24  ;;  %535 = vrcp.f32 %v307_v23  ;;  %vm363_vm15 = vmor %vm361_vm14, %vm362_vm13  ;;  %v382_v43 = vand.u32 2147483648, %v307_v23  ;;  %v380_v45 = vand.u32 2147483647, %v307_v23 }
 0x1ca   :  { %433 = vst [vmem:[#allocation7 + $0x10] sm:$0xff] %v354_v26  ;;  %v358_v27 = vsub.f32 1.0, %v357_v25  ;;  %vm376_vm2 = vweird.f32 %v307_v23 }
 0x1cb   :  { %v383_v49 = vor.u32 1.1754944e-38, %v382_v43  ;;  %vm381_vm4 = vcmp.eq.f32.partialorder %v380_v45, 8.507059e+37 }
 0x1cc   :  { %v359_v29 = vmul.f32 %v532_v21, %v358_v27 }
 0x1ce   :  { %v534_v32 = vpop.eup %533  ;;  %v360_v33 = vadd.f32 %v532_v21, %v359_v29 }
 0x1cf   :  { %v536_v34 = vpop.eup %535  ;;  %v308_v36 = vadd.f32 1.0, %v534_v32 }
 0x1d0   :  { %v364_v37 = vsel %vm363_vm15, %v532_v21, %v360_v33  ;;  %v372_v38 = vmul.f32 %v536_v34, %v307_v23  ;;  %vm377_vm1 = vweird.f32 %v536_v34 }
 0x1d1   :  { %v369_v39 = vsel %vm366_vm0, %v368_v35, %v364_v37  ;;  %537 = vrcp.f32 %v308_v36  ;;  %v273_v40 = vpop.f32.mrf.mxu3  ;;  %vm378_vm3 = vmor %vm376_vm2, %vm377_vm1  ;;  %v397_v56 = vand.u32 2147483648, %v308_v36  ;;  %v395_v59 = vand.u32 2147483647, %v308_v36 }
 0x1d2   :  { %434 = vst [vmem:[#allocation7 + $0x18] sm:$0xff] %v369_v39  ;;  %v373_v41 = vsub.f32 1.0, %v372_v38  ;;  %v274_v42 = vadd.f32 %v745_v30, %v273_v40  ;;  %vm391_vm6 = vweird.f32 %v308_v36 }
 0x1d3   :  { %v398_v63 = vor.u32 1.1754944e-38, %v397_v56  ;;  %vm396_vm8 = vcmp.eq.f32.partialorder %v395_v59, 8.507059e+37 }
 0x1d4   :  { %v374_v44 = vmul.f32 %v536_v34, %v373_v41  ;;  %v473_v46 = vmul.f32 -1.442695, %v274_v42 }
 0x1d6   :  { %v375_v47 = vadd.f32 %v536_v34, %v374_v44  ;;  %539 = vpow2.f32 %v473_v46 }
 0x1d7   :  { %v538_v48 = vpop.eup %537 }
 0x1d8   :  { %v379_v50 = vsel %vm378_vm3, %v536_v34, %v375_v47  ;;  %v387_v51 = vmul.f32 %v538_v48, %v308_v36  ;;  %vm392_vm5 = vweird.f32 %v538_v48 }
 0x1d9   :  { %v384_v52 = vsel %vm381_vm4, %v383_v49, %v379_v50  ;;  %v276_v53 = vpop.f32.mrf.mxu3  ;;  %vm393_vm7 = vmor %vm391_vm6, %vm392_vm5 }
 0x1da   :  { %435 = vst [vmem:[#allocation7 + $0x20] sm:$0xff] %v384_v52  ;;  %v388_v54 = vsub.f32 1.0, %v387_v51  ;;  %v277_v55 = vadd.f32 %v745_v30, %v276_v53 }
 0x1dc   :  { %v540_v57 = vpop.eup %539  ;;  %v389_v58 = vmul.f32 %v538_v48, %v388_v54  ;;  %v474_v60 = vmul.f32 -1.442695, %v277_v55 }
 0x1dd   :  { %v309_v61 = vadd.f32 1.0, %v540_v57 }
 0x1de   :  { %v390_v62 = vadd.f32 %v538_v48, %v389_v58  ;;  %541 = vpow2.f32 %v474_v60 }
 0x1df   :  { %543 = vrcp.f32 %v309_v61  ;;  %v412_v6 = vand.u32 2147483648, %v309_v61  ;;  %v410_v8 = vand.u32 2147483647, %v309_v61  ;;  %vm406_vm10 = vweird.f32 %v309_v61 }
 0x1e0   :  { %v394_v0 = vsel %vm393_vm7, %v538_v48, %v390_v62 }
 0x1e1   :  { %v399_v1 = vsel %vm396_vm8, %v398_v63, %v394_v0  ;;  %v413_v11 = vor.u32 1.1754944e-38, %v412_v6  ;;  %vm411_vm12 = vcmp.eq.f32.partialorder %v410_v8, 8.507059e+37 }
 0x1e2   :  { %436 = vst [vmem:[#allocation7 + $0x28] sm:$0xff] %v399_v1 }
 0x1e4   :  { %v542_v2 = vpop.eup %541 }
 0x1e5   :  { %v544_v3 = vpop.eup %543  ;;  %v310_v30 = vadd.f32 1.0, %v542_v2 }
 0x1e6   :  { %v402_v4 = vmul.f32 %v544_v3, %v309_v61  ;;  %vm407_vm9 = vweird.f32 %v544_v3 }
 0x1e7   :  { %545 = vrcp.f32 %v310_v30  ;;  %vm408_vm11 = vmor %vm406_vm10, %vm407_vm9  ;;  %v427_v16 = vand.u32 2147483648, %v310_v30  ;;  %v425_v18 = vand.u32 2147483647, %v310_v30  ;;  %vm421_vm14 = vweird.f32 %v310_v30 }
 0x1e8   :  { %v403_v5 = vsub.f32 1.0, %v402_v4 }
 0x1e9   :  { %v428_v20 = vor.u32 1.1754944e-38, %v427_v16  ;;  %vm426_vm0 = vcmp.eq.f32.partialorder %v425_v18, 8.507059e+37 }
 0x1ea   :  { %v404_v7 = vmul.f32 %v544_v3, %v403_v5 }
 0x1ec   :  { %v405_v9 = vadd.f32 %v544_v3, %v404_v7 }
 0x1ed   :  { %v546_v10 = vpop.eup %545 }
 0x1ee   :  { %v409_v12 = vsel %vm408_vm11, %v544_v3, %v405_v9  ;;  %v417_v13 = vmul.f32 %v546_v10, %v310_v30  ;;  %vm422_vm13 = vweird.f32 %v546_v10 }
 0x1ef   :  { %v414_v14 = vsel %vm411_vm12, %v413_v11, %v409_v12  ;;  %vm423_vm15 = vmor %vm421_vm14, %vm422_vm13 }
 0x1f0   :  { %437 = vst [vmem:[#allocation7 + $0x30] sm:$0xff] %v414_v14  ;;  %v418_v15 = vsub.f32 1.0, %v417_v13 }
 0x1f2   :  { %v419_v17 = vmul.f32 %v546_v10, %v418_v15 }
 0x1f4   :  { %v420_v19 = vadd.f32 %v546_v10, %v419_v17 }
 0x1f6   :  { %v424_v21 = vsel %vm423_vm15, %v546_v10, %v420_v19 }
 0x1f7   :  { %v429_v22 = vsel %vm426_vm0, %v428_v20, %v424_v21 }
 0x1f8   :  { %438 = vst [vmem:[#allocation7 + $0x38] sm:$0xff] %v429_v22 }
 0x1f9   :  { %451 = dma.vmem_to_hbm [thread:$0]  %s444_s14, 1024, %s446_s17, [#allocation4], %s626_s9, %s626_s9, %s627_s10  }
 0x1fa   :  { %623 = dma.done.wait [#allocation4], 1024  }
 0x1fb   :  { %624 = vsyncadd [#allocation4], 4294966272 }
 0x1fc   :  { %456 = vsyncpa [#allocation3], 1 }
 0x1fd   :  { %457 = vsyncpa [#allocation6], 1 }
 0x1fe   :  { %458 = vsyncpa [#allocation4], 1 }

</bundles_post_ra>
